<compile_context>
chip_gen: v7x
topology: tpu7x:2x2x1
jax: 0.10.0
libtpu: 0.0.40
codegen_flags: <defaults>
</compile_context>

<pallas_src>
import functools

import jax
import jax.numpy as jnp
import numpy as np
from jax.experimental import pallas as pl
from jax.experimental.pallas import tpu as pltpu


def _round_up(x, m):
    return ((x + m - 1) // m) * m


def _attention_interaction_kernel(emb_ref, w1t_ref, b1c_ref, w2bd_ref, b2_ref,
                                  out_ref, acts_ref, *, pairs, attention_dim):
    """One lane-aligned batch tile.

    emb_ref  : [F, E, TB]   embeddings, batch on the lane axis (bf16 or f32 storage)
    w1t_ref  : [2A, E]      fused Linear1 weight (rows 0..A-1 act on emb_i, A..2A-1 on emb_j)
    b1c_ref  : [A, 1]       Linear1 bias as a column (f32)
    w2bd_ref : [P, P*A]     block-diagonal Linear2 weight (f32)
    b2_ref   : [1, 1]       Linear2 bias (SMEM scalar)
    out_ref  : [P, TB]      attention scores, batch on lanes
    acts_ref : [P*A, TB]    VMEM scratch for the ReLU activations of every pair
    """
    F_, E, TB = emb_ref.shape
    A = attention_dim

    # Upcast at the dot: bf16 (when used) is only a storage/DMA format.  This keeps the dot
    # as f32 x f32 = f32, which runs on the MXU and in interpret/CPU fallback (the mixed
    # bf16 x bf16 = f32 dot is what broke the previous version at dispatch time).
    w1t = w1t_ref[...].astype(jnp.float32)                          # [2A, E]
    b1c = b1c_ref[...]                                              # [A, 1]

    # Per-feature projection; batch is already on lanes, so MXU results land in the exact
    # orientation the epilogue and the output need (no XLU transpose anywhere).
    ha = []
    hb = []
    for f in range(F_):
        h_f = jnp.dot(w1t, emb_ref[f].astype(jnp.float32),
                      preferred_element_type=jnp.float32)           # [2A, TB]
        ha.append(h_f[:A, :] + b1c)     # Linear1 bias folded in once per feature
        hb.append(h_f[A:, :])

    # Pair epilogue: VPU add + ReLU, written straight into the contiguous scratch
    # (avoids the extra [P*A, TB] copy a jnp.concatenate would materialize).
    # TODO(synk): for DLRM-scale F (hundreds of pairs) drive this with a lax.fori_loop over
    # SMEM (i, j) index tables, and replace the block-diagonal w2 matmul below with a
    # w2-broadcast multiply + per-pair sublane reduction (block-diag is O(P^2*A) memory).
    for p, (i, j) in enumerate(pairs):
        acts_ref[p * A:(p + 1) * A, :] = jnp.maximum(ha[i] + hb[j], 0.0)

    # One matmul folds the w2 reduction of every pair -> lane-dense [P, TB] tile.
    scores = jnp.dot(w2bd_ref[...], acts_ref[...],
                     preferred_element_type=jnp.float32)            # [P, TB]
    out_ref[...] = scores + b2_ref[0, 0]


def attention_interaction(emb_stack, w1, b1, w2, b2, *, block_b=1024, use_bf16=False):
    """emb_stack: [F, B, E]; w1: [A, 2E]; b1: [A]; w2: [1, A]; b2: [1]  ->  [B, P]."""
    F_, B, E = emb_stack.shape
    A = w1.shape[0]
    pairs = tuple((i, j) for i in range(F_) for j in range(i + 1, F_))
    P = len(pairs)
    assert block_b % 128 == 0, "batch tile must stay lane-aligned"

    store_dtype = jnp.bfloat16 if use_bf16 else jnp.float32
    itemsize = 2 if use_bf16 else 4

    # Batch tile: always a multiple of 128 (unmasked, lane-dense output stores), large enough
    # to amortize the ~0.35 us per-grid-step overhead, but split into >= 2 tiles when the
    # batch allows so both v7x TensorCores get work (free on single-TC v5e/v6e).
    B_aligned = _round_up(B, 128)
    TB = min(block_b, B_aligned)
    if TB == B_aligned and B_aligned >= 256:
        TB = _round_up(B_aligned // 2, 128)
    n_tiles = -(-B_aligned // TB)
    Bp = n_tiles * TB

    # Fused, pre-transposed Linear1 weight: cat([e_i, e_j]) @ W1.T ==
    #   W1[:, :E] @ e_i  +  W1[:, E:] @ e_j   (per batch column).
    w1t = jnp.concatenate([w1[:, :E], w1[:, E:]], axis=0).astype(store_dtype)   # [2A, E]
    b1c = b1.reshape(A, 1).astype(jnp.float32)                                  # [A, 1]
    # Block-diagonal Linear2 weight: one matmul reduces all P pairs at once (fine at small P,
    # see the in-kernel TODO for DLRM-scale P).
    w2bd = jnp.kron(jnp.eye(P, dtype=jnp.float32),
                    w2.reshape(1, A).astype(jnp.float32))                       # [P, P*A]
    b2_sc = b2.reshape(1, 1).astype(jnp.float32)                                # SMEM scalar

    # Batch-on-lanes layout [F, E, B] (+ pad batch to Bp).  The transpose is a cheap XLA-side
    # relayout; it removes both the in-kernel f32 transpose and the E=16 lane padding.
    emb = jnp.transpose(emb_stack.astype(store_dtype), (0, 2, 1))               # [F, E, B]
    if Bp != B:
        emb = jnp.pad(emb, ((0, 0), (0, 0), (0, Bp - B)))

    # Scoped-VMEM limit sized from the actual live footprint (+ headroom), clamped to a safe
    # range for every generation (v5e default scoped is 16 MiB; v7x physical is 64 MiB).
    live = (2 * F_ * E * TB * itemsize          # double-buffered emb tiles
            + 2 * P * TB * 4                    # double-buffered output tiles
            + P * A * TB * 4                    # acts scratch
            + F_ * 2 * A * TB * 4               # per-feature f32 projections
            + (2 * A * E + A + P * P * A + 1) * 4)
    vmem_limit = int(min(max(3 * live, 16 * 1024 * 1024), 48 * 1024 * 1024))

    # Advisory cost estimate so XLA overlaps this tiny, overhead-bound call with the
    # wrapper-side transpose / final [:, :B].T.
    flops = 2 * F_ * Bp * E * 2 * A + 3 * P * A * Bp + 2 * P * (P * A) * Bp
    bytes_accessed = (F_ * Bp * E * itemsize + P * Bp * 4
                      + 2 * A * E * itemsize + (A + P * P * A + 1) * 4)

    kernel = functools.partial(_attention_interaction_kernel,
                               pairs=pairs, attention_dim=A)

    out_pb = pl.pallas_call(
        kernel,
        out_shape=jax.ShapeDtypeStruct((P, Bp), jnp.float32),
        grid=(n_tiles,),
        in_specs=[
            pl.BlockSpec((F_, E, TB), lambda b: (0, 0, b)),      # batch-tiled embeddings
            pl.BlockSpec((2 * A, E), lambda b: (0, 0)),          # fused Linear1 weight
            pl.BlockSpec((A, 1), lambda b: (0, 0)),              # Linear1 bias (column)
            pl.BlockSpec((P, P * A), lambda b: (0, 0)),          # block-diag Linear2 weight
            pl.BlockSpec(memory_space=pltpu.MemorySpace.SMEM),   # Linear2 bias scalar
        ],
        out_specs=pl.BlockSpec((P, TB), lambda b: (0, b)),       # lane-dense [P, B] tile
        scratch_shapes=[pltpu.VMEM((P * A, TB), jnp.float32)],   # pair activations
        compiler_params=pltpu.CompilerParams(
            dimension_semantics=("parallel",),
            vmem_limit_bytes=vmem_limit,
        ),
        cost_estimate=pl.CostEstimate(flops=flops, transcendentals=0,
                                      bytes_accessed=bytes_accessed),
    )(emb, w1t, b1c, w2bd, b2_sc)

    # [P, Bp] -> [B, P]; small, lane-dense transpose handled by XLA outside the kernel.
    return out_pb[:, :B].T


def attention_interaction_ref(emb_stack, w1, b1, w2, b2):
    """Pure-JAX reference mirroring the PyTorch forward (f32, highest matmul precision)."""
    F_, B, E = emb_stack.shape
    hp = jax.lax.Precision.HIGHEST
    outs = []
    for i in range(F_):
        for j in range(i + 1, F_):
            cat = jnp.concatenate([emb_stack[i], emb_stack[j]], axis=-1)   # [B, 2E]
            h = jnp.maximum(jnp.dot(cat, w1.T, precision=hp) + b1, 0.0)    # [B, A]
            outs.append(jnp.dot(h, w2.T, precision=hp) + b2)               # [B, 1]
    return jnp.concatenate(outs, axis=-1)                                  # [B, P]


if __name__ == "__main__":
    num_sparse_features = 5    # F -> P = 10 pairs
    embedding_dim = 16         # E
    attention_dim = 32         # A

    key = jax.random.PRNGKey(0)
    k_emb, k_w1, k_b1, k_w2, k_b2 = jax.random.split(key, 5)

    # Deterministic synthetic parameters (shapes as in nn.Linear from __init__).
    w1 = jax.random.normal(k_w1, (attention_dim, 2 * embedding_dim), jnp.float32) * 0.1
    b1 = jax.random.normal(k_b1, (attention_dim,), jnp.float32) * 0.1
    w2 = jax.random.normal(k_w2, (1, attention_dim), jnp.float32) * 0.1
    b2 = jax.random.normal(k_b2, (1,), jnp.float32) * 0.1

    # 1) Small batch (B=8, padded to one 128-wide lane-aligned tile), f32 storage.
    batch = 8
    emb_small = jax.random.normal(
        k_emb, (num_sparse_features, batch, embedding_dim), jnp.float32)
    out_f32 = jax.block_until_ready(
        attention_interaction(emb_small, w1, b1, w2, b2, use_bf16=False))
    ref_small = attention_interaction_ref(emb_small, w1, b1, w2, b2)
    np.testing.assert_allclose(np.asarray(out_f32), np.asarray(ref_small),
                               rtol=2e-3, atol=2e-3)

    # 2) Larger batch exercising the batch grid (2 tiles of 256), padding and bf16 storage.
    batch_big = 384
    emb_big = jax.random.normal(
        k_emb, (num_sparse_features, batch_big, embedding_dim), jnp.float32)
    out_bf16 = jax.block_until_ready(
        attention_interaction(emb_big, w1, b1, w2, b2, use_bf16=True))
    ref_big = attention_interaction_ref(emb_big, w1, b1, w2, b2)
    np.testing.assert_allclose(np.asarray(out_bf16), np.asarray(ref_big),
                               rtol=5e-2, atol=5e-2)   # bf16 storage, f32 compute

    print("KERNEL_OK")
</pallas_src>

<mosaic_0001>
module attributes {stable_mosaic.version = 11 : i64} {
  func.func @_attention_interaction_kernel(%arg0: i32, %arg1: memref<5x16x128xf32, #tpu.memory_space<vmem>>, %arg2: memref<64x16xf32, #tpu.memory_space<vmem>>, %arg3: memref<32x1xf32, #tpu.memory_space<vmem>>, %arg4: memref<10x320xf32, #tpu.memory_space<vmem>>, %arg5: memref<1x1xf32, #tpu.memory_space<smem>>, %arg6: memref<10x128xf32, #tpu.memory_space<vmem>>, %arg7: memref<320x128xf32, #tpu.memory_space<vmem>>) attributes {dimension_semantics = [#tpu.dimension_semantics<parallel>], iteration_bounds = array<i64: 1>, scalar_prefetch = 0 : i64, scratch_operands = 1 : i64, tpu.core_type = #tpu.core_type<tc>, window_params = [{transform_indices = @transform_0, window_bounds = array<i64: 5, 16, 128>}, {pipeline_mode = #tpu.pipeline_mode<synchronous>, transform_indices = @transform_1, window_bounds = array<i64: 64, 16>}, {pipeline_mode = #tpu.pipeline_mode<synchronous>, transform_indices = @transform_2, window_bounds = array<i64: 32, 1>}, {pipeline_mode = #tpu.pipeline_mode<synchronous>, transform_indices = @transform_3, window_bounds = array<i64: 10, 320>}, {transform_indices = @transform_4, window_bounds = array<i64: 1, 1>}, {transform_indices = @transform_5, window_bounds = array<i64: 10, 128>}]} {
    %c0 = arith.constant 0 : index
    %c0_0 = arith.constant 0 : index
    %0 = vector.load %arg2[%c0, %c0_0] : memref<64x16xf32, #tpu.memory_space<vmem>>, vector<64x16xf32>
    %c0_1 = arith.constant 0 : index
    %c0_2 = arith.constant 0 : index
    %1 = vector.load %arg3[%c0_1, %c0_2] : memref<32x1xf32, #tpu.memory_space<vmem>>, vector<32x1xf32>
    %c0_3 = arith.constant 0 : index
    %c0_4 = arith.constant 0 : index
    %c0_5 = arith.constant 0 : index
    %2 = vector.load %arg1[%c0_3, %c0_4, %c0_5] : memref<5x16x128xf32, #tpu.memory_space<vmem>>, vector<1x16x128xf32>
    %3 = vector.shape_cast %2 : vector<1x16x128xf32> to vector<16x128xf32>
    %cst = arith.constant dense<0.000000e+00> : vector<64x128xf32>
    %4 = tpu.matmul %0, %3, %cst {dimension_numbers = #tpu.dot_dimension_numbers<[1], [0], [0], [1], [0, 0, 1, 1], [], []>} : vector<64x16xf32>, vector<16x128xf32>, vector<64x128xf32> -> vector<64x128xf32>
    %5 = vector.extract_strided_slice %4 {offsets = [0, 0], sizes = [32, 128], strides = [1, 1]} : vector<64x128xf32> to vector<32x128xf32>
    %6 = vector.broadcast %1 : vector<32x1xf32> to vector<32x128xf32>
    %7 = arith.addf %5, %6 : vector<32x128xf32>
    %c1 = arith.constant 1 : index
    %c0_6 = arith.constant 0 : index
    %c0_7 = arith.constant 0 : index
    %8 = vector.load %arg1[%c1, %c0_6, %c0_7] : memref<5x16x128xf32, #tpu.memory_space<vmem>>, vector<1x16x128xf32>
    %9 = vector.shape_cast %8 : vector<1x16x128xf32> to vector<16x128xf32>
    %cst_8 = arith.constant dense<0.000000e+00> : vector<64x128xf32>
    %10 = tpu.matmul %0, %9, %cst_8 {dimension_numbers = #tpu.dot_dimension_numbers<[1], [0], [0], [1], [0, 0, 1, 1], [], []>} : vector<64x16xf32>, vector<16x128xf32>, vector<64x128xf32> -> vector<64x128xf32>
    %11 = vector.extract_strided_slice %10 {offsets = [0, 0], sizes = [32, 128], strides = [1, 1]} : vector<64x128xf32> to vector<32x128xf32>
    %12 = vector.broadcast %1 : vector<32x1xf32> to vector<32x128xf32>
    %13 = arith.addf %11, %12 : vector<32x128xf32>
    %14 = vector.extract_strided_slice %10 {offsets = [32, 0], sizes = [32, 128], strides = [1, 1]} : vector<64x128xf32> to vector<32x128xf32>
    %c2 = arith.constant 2 : index
    %c0_9 = arith.constant 0 : index
    %c0_10 = arith.constant 0 : index
    %15 = vector.load %arg1[%c2, %c0_9, %c0_10] : memref<5x16x128xf32, #tpu.memory_space<vmem>>, vector<1x16x128xf32>
    %16 = vector.shape_cast %15 : vector<1x16x128xf32> to vector<16x128xf32>
    %cst_11 = arith.constant dense<0.000000e+00> : vector<64x128xf32>
    %17 = tpu.matmul %0, %16, %cst_11 {dimension_numbers = #tpu.dot_dimension_numbers<[1], [0], [0], [1], [0, 0, 1, 1], [], []>} : vector<64x16xf32>, vector<16x128xf32>, vector<64x128xf32> -> vector<64x128xf32>
    %18 = vector.extract_strided_slice %17 {offsets = [0, 0], sizes = [32, 128], strides = [1, 1]} : vector<64x128xf32> to vector<32x128xf32>
    %19 = vector.broadcast %1 : vector<32x1xf32> to vector<32x128xf32>
    %20 = arith.addf %18, %19 : vector<32x128xf32>
    %21 = vector.extract_strided_slice %17 {offsets = [32, 0], sizes = [32, 128], strides = [1, 1]} : vector<64x128xf32> to vector<32x128xf32>
    %c3 = arith.constant 3 : index
    %c0_12 = arith.constant 0 : index
    %c0_13 = arith.constant 0 : index
    %22 = vector.load %arg1[%c3, %c0_12, %c0_13] : memref<5x16x128xf32, #tpu.memory_space<vmem>>, vector<1x16x128xf32>
    %23 = vector.shape_cast %22 : vector<1x16x128xf32> to vector<16x128xf32>
    %cst_14 = arith.constant dense<0.000000e+00> : vector<64x128xf32>
    %24 = tpu.matmul %0, %23, %cst_14 {dimension_numbers = #tpu.dot_dimension_numbers<[1], [0], [0], [1], [0, 0, 1, 1], [], []>} : vector<64x16xf32>, vector<16x128xf32>, vector<64x128xf32> -> vector<64x128xf32>
    %25 = vector.extract_strided_slice %24 {offsets = [0, 0], sizes = [32, 128], strides = [1, 1]} : vector<64x128xf32> to vector<32x128xf32>
    %26 = vector.broadcast %1 : vector<32x1xf32> to vector<32x128xf32>
    %27 = arith.addf %25, %26 : vector<32x128xf32>
    %28 = vector.extract_strided_slice %24 {offsets = [32, 0], sizes = [32, 128], strides = [1, 1]} : vector<64x128xf32> to vector<32x128xf32>
    %c4 = arith.constant 4 : index
    %c0_15 = arith.constant 0 : index
    %c0_16 = arith.constant 0 : index
    %29 = vector.load %arg1[%c4, %c0_15, %c0_16] : memref<5x16x128xf32, #tpu.memory_space<vmem>>, vector<1x16x128xf32>
    %30 = vector.shape_cast %29 : vector<1x16x128xf32> to vector<16x128xf32>
    %cst_17 = arith.constant dense<0.000000e+00> : vector<64x128xf32>
    %31 = tpu.matmul %0, %30, %cst_17 {dimension_numbers = #tpu.dot_dimension_numbers<[1], [0], [0], [1], [0, 0, 1, 1], [], []>} : vector<64x16xf32>, vector<16x128xf32>, vector<64x128xf32> -> vector<64x128xf32>
    %32 = vector.extract_strided_slice %31 {offsets = [32, 0], sizes = [32, 128], strides = [1, 1]} : vector<64x128xf32> to vector<32x128xf32>
    %33 = arith.addf %7, %14 : vector<32x128xf32>
    %cst_18 = arith.constant 0.000000e+00 : f32
    %34 = vector.broadcast %cst_18 : f32 to vector<32x128xf32>
    %35 = arith.maximumf %33, %34 : vector<32x128xf32>
    %c0_19 = arith.constant 0 : index
    %c0_20 = arith.constant 0 : index
    %36 = vector.load %arg7[%c0_19, %c0_20] : memref<320x128xf32, #tpu.memory_space<vmem>>, vector<32x128xf32>
    tpu.vector_store %arg7[%c0_19, %c0_20], %35 {strides = array<i32>} : memref<320x128xf32, #tpu.memory_space<vmem>>, vector<32x128xf32>,
    %37 = arith.addf %7, %21 : vector<32x128xf32>
    %cst_21 = arith.constant 0.000000e+00 : f32
    %38 = vector.broadcast %cst_21 : f32 to vector<32x128xf32>
    %39 = arith.maximumf %37, %38 : vector<32x128xf32>
    %c32 = arith.constant 32 : index
    %c0_22 = arith.constant 0 : index
    %40 = vector.load %arg7[%c32, %c0_22] : memref<320x128xf32, #tpu.memory_space<vmem>>, vector<32x128xf32>
    tpu.vector_store %arg7[%c32, %c0_22], %39 {strides = array<i32>} : memref<320x128xf32, #tpu.memory_space<vmem>>, vector<32x128xf32>,
    %41 = arith.addf %7, %28 : vector<32x128xf32>
    %cst_23 = arith.constant 0.000000e+00 : f32
    %42 = vector.broadcast %cst_23 : f32 to vector<32x128xf32>
    %43 = arith.maximumf %41, %42 : vector<32x128xf32>
    %c64 = arith.constant 64 : index
    %c0_24 = arith.constant 0 : index
    %44 = vector.load %arg7[%c64, %c0_24] : memref<320x128xf32, #tpu.memory_space<vmem>>, vector<32x128xf32>
    tpu.vector_store %arg7[%c64, %c0_24], %43 {strides = array<i32>} : memref<320x128xf32, #tpu.memory_space<vmem>>, vector<32x128xf32>,
    %45 = arith.addf %7, %32 : vector<32x128xf32>
    %cst_25 = arith.constant 0.000000e+00 : f32
    %46 = vector.broadcast %cst_25 : f32 to vector<32x128xf32>
    %47 = arith.maximumf %45, %46 : vector<32x128xf32>
    %c96 = arith.constant 96 : index
    %c0_26 = arith.constant 0 : index
    %48 = vector.load %arg7[%c96, %c0_26] : memref<320x128xf32, #tpu.memory_space<vmem>>, vector<32x128xf32>
    tpu.vector_store %arg7[%c96, %c0_26], %47 {strides = array<i32>} : memref<320x128xf32, #tpu.memory_space<vmem>>, vector<32x128xf32>,
    %49 = arith.addf %13, %21 : vector<32x128xf32>
    %cst_27 = arith.constant 0.000000e+00 : f32
    %50 = vector.broadcast %cst_27 : f32 to vector<32x128xf32>
    %51 = arith.maximumf %49, %50 : vector<32x128xf32>
    %c128 = arith.constant 128 : index
    %c0_28 = arith.constant 0 : index
    %52 = vector.load %arg7[%c128, %c0_28] : memref<320x128xf32, #tpu.memory_space<vmem>>, vector<32x128xf32>
    tpu.vector_store %arg7[%c128, %c0_28], %51 {strides = array<i32>} : memref<320x128xf32, #tpu.memory_space<vmem>>, vector<32x128xf32>,
    %53 = arith.addf %13, %28 : vector<32x128xf32>
    %cst_29 = arith.constant 0.000000e+00 : f32
    %54 = vector.broadcast %cst_29 : f32 to vector<32x128xf32>
    %55 = arith.maximumf %53, %54 : vector<32x128xf32>
    %c160 = arith.constant 160 : index
    %c0_30 = arith.constant 0 : index
    %56 = vector.load %arg7[%c160, %c0_30] : memref<320x128xf32, #tpu.memory_space<vmem>>, vector<32x128xf32>
    tpu.vector_store %arg7[%c160, %c0_30], %55 {strides = array<i32>} : memref<320x128xf32, #tpu.memory_space<vmem>>, vector<32x128xf32>,
    %57 = arith.addf %13, %32 : vector<32x128xf32>
    %cst_31 = arith.constant 0.000000e+00 : f32
    %58 = vector.broadcast %cst_31 : f32 to vector<32x128xf32>
    %59 = arith.maximumf %57, %58 : vector<32x128xf32>
    %c192 = arith.constant 192 : index
    %c0_32 = arith.constant 0 : index
    %60 = vector.load %arg7[%c192, %c0_32] : memref<320x128xf32, #tpu.memory_space<vmem>>, vector<32x128xf32>
    tpu.vector_store %arg7[%c192, %c0_32], %59 {strides = array<i32>} : memref<320x128xf32, #tpu.memory_space<vmem>>, vector<32x128xf32>,
    %61 = arith.addf %20, %28 : vector<32x128xf32>
    %cst_33 = arith.constant 0.000000e+00 : f32
    %62 = vector.broadcast %cst_33 : f32 to vector<32x128xf32>
    %63 = arith.maximumf %61, %62 : vector<32x128xf32>
    %c224 = arith.constant 224 : index
    %c0_34 = arith.constant 0 : index
    %64 = vector.load %arg7[%c224, %c0_34] : memref<320x128xf32, #tpu.memory_space<vmem>>, vector<32x128xf32>
    tpu.vector_store %arg7[%c224, %c0_34], %63 {strides = array<i32>} : memref<320x128xf32, #tpu.memory_space<vmem>>, vector<32x128xf32>,
    %65 = arith.addf %20, %32 : vector<32x128xf32>
    %cst_35 = arith.constant 0.000000e+00 : f32
    %66 = vector.broadcast %cst_35 : f32 to vector<32x128xf32>
    %67 = arith.maximumf %65, %66 : vector<32x128xf32>
    %c256 = arith.constant 256 : index
    %c0_36 = arith.constant 0 : index
    %68 = vector.load %arg7[%c256, %c0_36] : memref<320x128xf32, #tpu.memory_space<vmem>>, vector<32x128xf32>
    tpu.vector_store %arg7[%c256, %c0_36], %67 {strides = array<i32>} : memref<320x128xf32, #tpu.memory_space<vmem>>, vector<32x128xf32>,
    %69 = arith.addf %27, %32 : vector<32x128xf32>
    %cst_37 = arith.constant 0.000000e+00 : f32
    %70 = vector.broadcast %cst_37 : f32 to vector<32x128xf32>
    %71 = arith.maximumf %69, %70 : vector<32x128xf32>
    %c288 = arith.constant 288 : index
    %c0_38 = arith.constant 0 : index
    %72 = vector.load %arg7[%c288, %c0_38] : memref<320x128xf32, #tpu.memory_space<vmem>>, vector<32x128xf32>
    tpu.vector_store %arg7[%c288, %c0_38], %71 {strides = array<i32>} : memref<320x128xf32, #tpu.memory_space<vmem>>, vector<32x128xf32>,
    %c0_39 = arith.constant 0 : index
    %c0_40 = arith.constant 0 : index
    %73 = vector.load %arg4[%c0_39, %c0_40] : memref<10x320xf32, #tpu.memory_space<vmem>>, vector<10x320xf32>
    %c0_41 = arith.constant 0 : index
    %c0_42 = arith.constant 0 : index
    %74 = vector.load %arg7[%c0_41, %c0_42] : memref<320x128xf32, #tpu.memory_space<vmem>>, vector<320x128xf32>
    %cst_43 = arith.constant dense<0.000000e+00> : vector<10x128xf32>
    %75 = tpu.matmul %73, %74, %cst_43 {dimension_numbers = #tpu.dot_dimension_numbers<[1], [0], [0], [1], [0, 0, 1, 1], [], []>} : vector<10x320xf32>, vector<320x128xf32>, vector<10x128xf32> -> vector<10x128xf32>
    %c0_44 = arith.constant 0 : index
    %c0_45 = arith.constant 0 : index
    %76 = memref.load %arg5[%c0_44, %c0_45] : memref<1x1xf32, #tpu.memory_space<smem>>
    %77 = vector.broadcast %76 : f32 to vector<10x128xf32>
    %78 = arith.addf %75, %77 : vector<10x128xf32>
    %c0_46 = arith.constant 0 : index
    %c0_47 = arith.constant 0 : index
    %79 = vector.load %arg6[%c0_46, %c0_47] : memref<10x128xf32, #tpu.memory_space<vmem>>, vector<10x128xf32>
    tpu.vector_store %arg6[%c0_46, %c0_47], %78 {strides = array<i32>} : memref<10x128xf32, #tpu.memory_space<vmem>>, vector<10x128xf32>,
    return
  }
  func.func @transform_0(%arg0: i32) -> (i32, i32, i32) {
    %c0_i32 = arith.constant 0 : i32
    %c0_i32_0 = arith.constant 0 : i32
    %c0_i32_1 = arith.constant 0 : i32
    return %c0_i32, %c0_i32_0, %arg0 : i32, i32, i32
  }
  func.func @transform_1(%arg0: i32) -> (i32, i32) {
    %c0_i32 = arith.constant 0 : i32
    %c0_i32_0 = arith.constant 0 : i32
    %c0_i32_1 = arith.constant 0 : i32
    return %c0_i32, %c0_i32_0 : i32, i32
  }
  func.func @transform_2(%arg0: i32) -> (i32, i32) {
    %c0_i32 = arith.constant 0 : i32
    %c0_i32_0 = arith.constant 0 : i32
    %c0_i32_1 = arith.constant 0 : i32
    return %c0_i32, %c0_i32_0 : i32, i32
  }
  func.func @transform_3(%arg0: i32) -> (i32, i32) {
    %c0_i32 = arith.constant 0 : i32
    %c0_i32_0 = arith.constant 0 : i32
    %c0_i32_1 = arith.constant 0 : i32
    return %c0_i32, %c0_i32_0 : i32, i32
  }
  func.func @transform_4(%arg0: i32) -> (i32, i32) {
    %c0_i32 = arith.constant 0 : i32
    %c0_i32_0 = arith.constant 0 : i32
    %c0_i32_1 = arith.constant 0 : i32
    return %c0_i32, %c0_i32_0 : i32, i32
  }
  func.func @transform_5(%arg0: i32) -> (i32, i32) {
    %c0_i32 = arith.constant 0 : i32
    %c0_i32_0 = arith.constant 0 : i32
    return %c0_i32, %arg0 : i32, i32
  }
}

</mosaic_0001>

<bundles_post_ra>
// kernel: tpu_custom_call.1
= control target key start
LH: loop header
LB: loop body
LE: loop exit
PB: predicated region body
PF: predicated region fallthrough
CT: control target
= control target key end

     0   :  { %vm36_vm0 = vcmask 130048   ;;  %v1314_v6 = vmov 0   ;;  %s1613_s0 = inlined_call_operand.vmem [shape: f32[5,16,128], index: 0, kind: input, shape index: {}]   ;;  %s1614_s1 = inlined_call_operand.vmem [shape: f32[64,16], index: 1, kind: input, shape index: {}]   ;;  %s1615_s2 = inlined_call_operand.vmem [shape: f32[32,1], index: 2, kind: input, shape index: {}]   ;;  %s1616_s3 = inlined_call_operand.vmem [shape: f32[10,320], index: 3, kind: input, shape index: {}]   ;;  %s1617_s4 = inlined_call_operand.<no memory space> [shape: f32[1,1], index: 4, kind: input, shape index: {}]   ;;  %s1618_s5 = inlined_call_operand.hbm [shape: f32[10,128], index: 5, kind: output, shape index: {}]  }
   0x1   :  { %v34_v0 = vld [vmem:[%s1613_s0] sm:$0xff]  ;;  %v35_v1 = vld [vmem:[%s1613_s0 + $0x8] sm:$0xff]  ;;  %v977_v2 = vld [vmem:[%s1613_s0 + $0x10] sm:$0xff]  ;;  %1288 = vset.pattern.permute.xlu0 %v1314_v6  ;;  %1289 = vset.pattern.permute.xlu1 %v1314_v6 }
   0x2   :  { %v1216_v3 = vpack.c.bf16 %v35_v1, %v34_v0  ;;  %v978_v4 = vld [vmem:[%s1613_s0 + $0x18] sm:$0xff]  ;;  %v1363_v5 = vld [vmem:[%s1614_s1] sm:$0xff]  ;;  %v988_v9 = vld [vmem:[%s1613_s0 + $0x28] sm:$0xff] }
   0x3   :  { %v1220_v7 = vpack.c.bf16 %v978_v4, %v977_v2  ;;  %1121 = vmatprep.mubr.msk.f32.mxu0 %vm36_vm0, %v1363_v5  ;;  %1137 = vmatprep.mubr.msk.f32.mxu1 %vm36_vm0, %v1363_v5  ;;  %v987_v8 = vld [vmem:[%s1613_s0 + $0x20] sm:$0xff]  ;;  %v23_v11 = vld [vmem:[%s1614_s1 + $0x8] sm:$0xff]  ;;  %v997_v12 = vld [vmem:[%s1613_s0 + $0x30] sm:$0xff] }
   0x4   :  { %1217 = vmatprep.subr.bf16.mxu0 %v1216_v3  ;;  %v1224_v10 = vpack.c.bf16 %v988_v9, %v987_v8  ;;  %v998_v13 = vld [vmem:[%s1613_s0 + $0x38] sm:$0xff]  ;;  %v1007_v15 = vld [vmem:[%s1613_s0 + $0x40] sm:$0xff]  ;;  %v1008_v16 = vld [vmem:[%s1613_s0 + $0x48] sm:$0xff] }
   0x5   :  { %1221 = vmatprep.subr.bf16.mxu1 %v1220_v7  ;;  %1219 = vmatpush3.bf16.msra.mxu0 %v1216_v3  ;;  %v1228_v14 = vpack.c.bf16 %v998_v13, %v997_v12  ;;  %v24_v17 = vld [vmem:[%s1614_s1 + $0x10] sm:$0xff]  ;;  %v1232_v18 = vpack.c.bf16 %v1008_v16, %v1007_v15 }
   0x6   :  { %1223 = vmatpush3.bf16.msra.mxu1 %v1220_v7  ;;  %1225 = vmatprep.subr.bf16.mxu0 %v1224_v10 }
   0x7   :  { %1229 = vmatprep.subr.bf16.mxu1 %v1228_v14 }
   0x8   :  { %1122 = vmatmul.mubr.msk.f32.vlgmr.msra.gmra.mrb[0].mxu0 %vm36_vm0, %v23_v11 }
   0x9   :  { %11 = vsyncpa [#allocation5], 0  ;;  %1138 = vmatmul.mubr.msk.f32.vlgmr.msra.gmra.mrb[0].mxu1 %vm36_vm0, %v23_v11  ;;  %1227 = vmatpush3.bf16.msra.mxu0 %v1224_v10  ;;  %v25_v19 = vld [vmem:[%s1614_s1 + $0x18] sm:$0xff]  ;;  %v30_v20 = vld [vmem:[%s1615_s2] sm:$0xff]  ;;  %vm794_vm1 = vcmask 523264   ;;  %s1315_s0 = smov [#allocation4]  }
   0xa   :  { %1124 = vmatprep.mubr.msk.f32.mxu0 %vm36_vm0, %v24_v17  ;;  %1140 = vmatprep.mubr.msk.f32.mxu1 %vm36_vm0, %v24_v17  ;;  %v26_v21 = vld [vmem:[%s1614_s1 + $0x20] sm:$0xff]  ;;  %v32_v22 = vld [vmem:[%s1615_s2 + $0x10] sm:$0xff]  ;;  %v27_v23 = vld [vmem:[%s1614_s1 + $0x28] sm:$0xff]  ;;  %s958_s23 = sshll.u32 %s1315_s0, 4  ;;  %s959_s23 = int_to_ptr.vmem [resolvable:$true] %s958_s23 }
   0xb   :  { %1231 = vmatpush3.bf16.msra.mxu1 %v1228_v14  ;;  %1233 = vmatprep.subr.bf16.mxu0 %v1232_v18  ;;  %v31_v24 = vld [vmem:[%s1615_s2 + $0x8] sm:$0xff]  ;;  %v28_v25 = vld [vmem:[%s1614_s1 + $0x30] sm:$0xff]  ;;  %v33_v26 = vld [vmem:[%s1615_s2 + $0x18] sm:$0xff]  ;;  %p1295_p1 = scmp.lt.s32.totalorder %s959_s23, %s959_s23 }
   0xc   :  { %1125 = vmatmul.mubr.msk.f32.gmra.mrb[2].mxu0 %vm36_vm0, %v25_v19  ;;  %164 = vperm.xlu0 %1288, %v30_v20   ;;  %v29_v27 = vld [vmem:[%s1614_s1 + $0x38] sm:$0xff]  ;;  %v747_v28 = vld [vmem:[%s1616_s3 + $0x8] sm:$0xff]  ;;  %v748_v29 = vld [vmem:[%s1616_s3 + $0x10] sm:$0xff] }
   0xd   :  { %1141 = vmatmul.mubr.msk.f32.gmra.mrb[2].mxu1 %vm36_vm0, %v25_v19  ;;  %1127 = vmatprep.mubr.msk.f32.mxu0 %vm36_vm0, %v26_v21 }
   0xe   :  { %1143 = vmatprep.mubr.msk.f32.mxu1 %vm36_vm0, %v26_v21  ;;  %174 = vperm.xlu1 %1289, %v32_v22  }
  0x10   :  { %1128 = vmatmul.mubr.msk.f32.gmra.mrb[4].mxu0 %vm36_vm0, %v27_v23  ;;  %169 = vperm.xlu0 %1288, %v31_v24  }
  0x11   :  { %1144 = vmatmul.mubr.msk.f32.gmra.mrb[4].mxu1 %vm36_vm0, %v27_v23  ;;  %1130 = vmatprep.mubr.msk.f32.mxu0 %vm36_vm0, %v28_v25 }
  0x12   :  { %1146 = vmatprep.mubr.msk.f32.mxu1 %vm36_vm0, %v28_v25  ;;  %179 = vperm.xlu1 %1289, %v33_v26  }
  0x14   :  { %1131 = vmatmul.mubr.msk.f32.gmra.mrb[6].mxu0 %vm36_vm0, %v29_v27 }
  0x15   :  { %1147 = vmatmul.mubr.msk.f32.gmra.mrb[6].mxu1 %vm36_vm0, %v29_v27  ;;  %1153 = vmatprep.mubr.msk.f32.mxu0 %vm36_vm0, %v1363_v5 }
  0x16   :  { %1169 = vmatprep.mubr.msk.f32.mxu1 %vm36_vm0, %v1363_v5 }
  0x18   :  { %1154 = vmatmul.mubr.msk.f32.vlgmr.msra.gmra.mrb[8].mxu0 %vm36_vm0, %v23_v11 }
  0x19   :  { %1170 = vmatmul.mubr.msk.f32.vlgmr.msra.gmra.mrb[8].mxu1 %vm36_vm0, %v23_v11  ;;  %1235 = vmatpush3.bf16.msra.mxu0 %v1232_v18 }
  0x1a   :  { %1156 = vmatprep.mubr.msk.f32.mxu0 %vm36_vm0, %v24_v17  ;;  %1172 = vmatprep.mubr.msk.f32.mxu1 %vm36_vm0, %v24_v17 }
  0x1c   :  { %1157 = vmatmul.mubr.msk.f32.gmra.mrb[10].mxu0 %vm36_vm0, %v25_v19 }
  0x1d   :  { %1173 = vmatmul.mubr.msk.f32.gmra.mrb[10].mxu1 %vm36_vm0, %v25_v19  ;;  %1159 = vmatprep.mubr.msk.f32.mxu0 %vm36_vm0, %v26_v21 }
  0x1e   :  { %1175 = vmatprep.mubr.msk.f32.mxu1 %vm36_vm0, %v26_v21 }
  0x20   :  { %1160 = vmatmul.mubr.msk.f32.gmra.mrb[12].mxu0 %vm36_vm0, %v27_v23 }
  0x21   :  { %1176 = vmatmul.mubr.msk.f32.gmra.mrb[12].mxu1 %vm36_vm0, %v27_v23  ;;  %1162 = vmatprep.mubr.msk.f32.mxu0 %vm36_vm0, %v28_v25 }
  0x22   :  { %1178 = vmatprep.mubr.msk.f32.mxu1 %vm36_vm0, %v28_v25 }
  0x24   :  { %1163 = vmatmul.mubr.msk.f32.gmra.mrb[14].mxu0 %vm36_vm0, %v29_v27 }
  0x25   :  { %1179 = vmatmul.mubr.msk.f32.gmra.mrb[14].mxu1 %vm36_vm0, %v29_v27  ;;  %1185 = vmatprep.mubr.msk.f32.mxu0 %vm36_vm0, %v1363_v5 }
  0x26   :  { %865 = vmatprep.mubr.f32.mxu1 %v747_v28 }
  0x28   :  { %1186 = vmatmul.mubr.msk.f32.vlgmr.msra.gmra.mrb[16].mxu0 %vm36_vm0, %v23_v11 }
  0x29   :  { %1188 = vmatprep.mubr.msk.f32.mxu0 %vm36_vm0, %v24_v17 }
  0x2c   :  { %1189 = vmatmul.mubr.msk.f32.gmra.mrb[18].mxu0 %vm36_vm0, %v25_v19 }
  0x2d   :  { %1191 = vmatprep.mubr.msk.f32.mxu0 %vm36_vm0, %v26_v21 }
  0x30   :  { %1192 = vmatmul.mubr.msk.f32.gmra.mrb[20].mxu0 %vm36_vm0, %v27_v23 }
  0x31   :  { %1194 = vmatprep.mubr.msk.f32.mxu0 %vm36_vm0, %v28_v25 }
  0x34   :  { %1195 = vmatmul.mubr.msk.f32.gmra.mrb[22].mxu0 %vm36_vm0, %v29_v27 }
  0x35   :  { %1213 = vmatprep.mubr.msk.f32.mxu0 %vm794_vm1, %v748_v29 }
  0x8b   :  { %v1468_v30 = vpop.permute.xlu0 %164 }
  0x8d   :  { %v1470_v34 = vpop.permute.xlu1 %174 }
  0x8f   :  { %v1472_v36 = vpop.permute.xlu0 %169 }
  0x91   :  { %v1477_v42 = vpop.permute.xlu1 %179 }
  0xdb   :  { %v1123_v31 = vpop.f32.mrb[0].mxu0 }
  0xdc   :  { %v127_v32 = vpop.f32.mrb[1].mxu0  ;;  %v1139_v33 = vpop.f32.mrb[0].mxu1  ;;  %v1475_v41 = vadd.f32 %v1123_v31, %v1472_v36 }
  0xdd   :  { %v255_v35 = vpop.f32.mrb[1].mxu1  ;;  %v1480_v44 = vadd.f32 %v1468_v30, %v127_v32  ;;  %v1505_v8 = vadd.f32 %v1139_v33, %v1472_v36 }
  0xde   :  { %v1508_v9 = vadd.f32 %v255_v35, %v1468_v30 }
  0xdf   :  { %v1126_v37 = vpop.f32.mrb[2].mxu0 }
  0xe0   :  { %v137_v38 = vpop.f32.mrb[3].mxu0  ;;  %v1142_v39 = vpop.f32.mrb[2].mxu1  ;;  %v1485_v50 = vadd.f32 %v1126_v37, %v1477_v42 }
  0xe1   :  { %v265_v40 = vpop.f32.mrb[3].mxu1  ;;  %v1488_v53 = vadd.f32 %v1470_v34, %v137_v38  ;;  %v1511_v10 = vadd.f32 %v1142_v39, %v1477_v42 }
  0xe2   :  { %v1514_v11 = vadd.f32 %v265_v40, %v1470_v34 }
  0xe3   :  { %v1129_v43 = vpop.f32.mrb[4].mxu0 }
  0xe4   :  { %v1145_v45 = vpop.f32.mrb[4].mxu1  ;;  %v147_v46 = vpop.f32.mrb[5].mxu0 }
  0xe5   :  { %v627_v47 = vadd.f32 %v1145_v45, %v1475_v41  ;;  %v275_v48 = vpop.f32.mrb[5].mxu1 }
  0xe6   :  { %v626_v49 = vadd.f32 %v275_v48, %v1480_v44 }
  0xe7   :  { %v631_v51 = vmax.f32 %v627_v47, 0.0  ;;  %v1132_v52 = vpop.f32.mrb[6].mxu0 }
  0xe8   :  { %v630_v54 = vmax.f32 %v626_v49, 0.0  ;;  %v1148_v55 = vpop.f32.mrb[6].mxu1  ;;  %v155_v56 = vpop.f32.mrb[7].mxu0 }
  0xe9   :  { %v629_v57 = vadd.f32 %v1148_v55, %v1485_v50  ;;  %v285_v58 = vpop.f32.mrb[7].mxu1 }
  0xea   :  { %v1491_v59 = vpack.c.bf16 %v631_v51, %v630_v54  ;;  %v628_v60 = vadd.f32 %v285_v58, %v1488_v53 }
  0xeb   :  { %v633_v61 = vmax.f32 %v629_v57, 0.0  ;;  %v1155_v62 = vpop.f32.mrb[8].mxu0 }
  0xec   :  { %v632_v63 = vmax.f32 %v628_v60, 0.0  ;;  %v367_v0 = vpop.f32.mrb[9].mxu0  ;;  %v1494_v1 = vpop.f32.mrb[8].mxu1  ;;  %v1517_v12 = vadd.f32 %v1155_v62, %v1472_v36 }
  0xed   :  { %v1496_v2 = vpop.f32.mrb[9].mxu1  ;;  %v1520_v13 = vadd.f32 %v367_v0, %v1468_v30 }
  0xee   :  { %v1498_v3 = vpack.c.bf16 %v633_v61, %v632_v63 }
  0xef   :  { %v1158_v4 = vpop.f32.mrb[10].mxu0 }
  0xf0   :  { %v377_v5 = vpop.f32.mrb[11].mxu0  ;;  %v1500_v6 = vpop.f32.mrb[10].mxu1  ;;  %v1523_v15 = vadd.f32 %v1158_v4, %v1477_v42 }
  0xf1   :  { %v1502_v7 = vpop.f32.mrb[11].mxu1  ;;  %v1526_v16 = vadd.f32 %v377_v5, %v1470_v34 }
  0xf3   :  { %v1161_v14 = vpop.f32.mrb[12].mxu0 }
  0xf4   :  { %v639_v17 = vadd.f32 %v1161_v14, %v1475_v41  ;;  %v675_v18 = vadd.f32 %v1161_v14, %v1505_v8  ;;  %v1177_v19 = vpop.f32.mrb[12].mxu1  ;;  %v387_v20 = vpop.f32.mrb[13].mxu0 }
  0xf5   :  { %v651_v21 = vadd.f32 %v1177_v19, %v1475_v41  ;;  %v687_v22 = vadd.f32 %v1177_v19, %v1505_v8  ;;  %v711_v23 = vadd.f32 %v1177_v19, %v1517_v12  ;;  %v638_v24 = vadd.f32 %v387_v20, %v1480_v44  ;;  %v499_v25 = vpop.f32.mrb[13].mxu1 }
  0xf6   :  { %v643_v26 = vmax.f32 %v639_v17, 0.0  ;;  %v679_v27 = vmax.f32 %v675_v18, 0.0  ;;  %v674_v28 = vadd.f32 %v387_v20, %v1508_v9  ;;  %v650_v29 = vadd.f32 %v499_v25, %v1480_v44 }
  0xf7   :  { %v655_v31 = vmax.f32 %v651_v21, 0.0  ;;  %v691_v32 = vmax.f32 %v687_v22, 0.0  ;;  %v715_v33 = vmax.f32 %v711_v23, 0.0  ;;  %v642_v35 = vmax.f32 %v638_v24, 0.0  ;;  %v1164_v37 = vpop.f32.mrb[14].mxu0 }
  0xf8   :  { %v678_v38 = vmax.f32 %v674_v28, 0.0  ;;  %v654_v39 = vmax.f32 %v650_v29, 0.0  ;;  %v686_v40 = vadd.f32 %v499_v25, %v1508_v9  ;;  %v710_v43 = vadd.f32 %v499_v25, %v1520_v13  ;;  %v1180_v45 = vpop.f32.mrb[14].mxu1  ;;  %v397_v46 = vpop.f32.mrb[15].mxu0 }
  0xf9   :  { %v1538_v47 = vpack.c.bf16 %v643_v26, %v642_v35  ;;  %v641_v48 = vadd.f32 %v1164_v37, %v1485_v50  ;;  %v677_v49 = vadd.f32 %v1164_v37, %v1511_v10  ;;  %v653_v51 = vadd.f32 %v1180_v45, %v1485_v50  ;;  %v509_v52 = vpop.f32.mrb[15].mxu1 }
  0xfa   :  { %v690_v54 = vmax.f32 %v686_v40, 0.0  ;;  %v714_v55 = vmax.f32 %v710_v43, 0.0  ;;  %v1543_v56 = vpack.c.bf16 %v655_v31, %v654_v39  ;;  %v689_v57 = vadd.f32 %v1180_v45, %v1511_v10 }
  0xfb   :  { %v645_v58 = vmax.f32 %v641_v48, 0.0  ;;  %v681_v60 = vmax.f32 %v677_v49, 0.0  ;;  %v657_v61 = vmax.f32 %v653_v51, 0.0  ;;  %v713_v62 = vadd.f32 %v1180_v45, %v1523_v15  ;;  %v1187_v63 = vpop.f32.mrb[16].mxu0 }
  0xfc   :  { %v693_v0 = vmax.f32 %v689_v57, 0.0  ;;  %v640_v4 = vadd.f32 %v397_v46, %v1488_v53  ;;  %v676_v5 = vadd.f32 %v397_v46, %v1514_v11  ;;  %v652_v14 = vadd.f32 %v509_v52, %v1488_v53  ;;  %v591_v17 = vpop.f32.mrb[17].mxu0 }
  0xfd   :  { %v717_v18 = vmax.f32 %v713_v62, 0.0  ;;  %v688_v19 = vadd.f32 %v509_v52, %v1514_v11  ;;  %v712_v20 = vadd.f32 %v509_v52, %v1526_v16  ;;  %v1236_v21 = vpack.c.bf16 %v679_v27, %v678_v38 }
  0xfe   :  { %v644_v22 = vmax.f32 %v640_v4, 0.0  ;;  %v680_v23 = vmax.f32 %v676_v5, 0.0  ;;  %v656_v24 = vmax.f32 %v652_v14, 0.0  ;;  %v1244_v25 = vpack.c.bf16 %v691_v32, %v690_v54 }
  0xff   :  { %v692_v26 = vmax.f32 %v688_v19, 0.0  ;;  %v716_v28 = vmax.f32 %v712_v20, 0.0  ;;  %1237 = vmatprep.subr.bf16.mxu1 %v1236_v21  ;;  %v1190_v29 = vpop.f32.mrb[18].mxu0  ;;  %v1552_v31 = vpack.c.bf16 %v715_v33, %v714_v55  ;;  %v519_v27 = vadd.f32 %v1494_v1, %v1472_v36  ;;  %v751_v21 = vld [vmem:[%s1616_s3 + $0x28] sm:$0x3] }
 0x100   :  { %v1250_v35 = vpack.c.bf16 %v645_v58, %v644_v22  ;;  %v1554_v37 = vpack.c.bf16 %v657_v61, %v656_v24  ;;  %1239 = vmatpush3.bf16.msra.mxu1 %v1491_v59  ;;  %v1240_v39 = vpack.c.bf16 %v681_v60, %v680_v23  ;;  %v599_v40 = vpop.f32.mrb[19].mxu0  ;;  %v518_v32 = vadd.f32 %v1496_v2, %v1468_v30  ;;  %v750_v22 = vld [vmem:[%s1616_s3 + $0x20] sm:$0x3]  ;;  %v749_v23 = vld [vmem:[%s1616_s3 + $0x18] sm:$0x3] }
 0x101   :  { %v1248_v43 = vpack.c.bf16 %v693_v0, %v692_v26  ;;  %v1557_v45 = vpack.c.bf16 %v717_v18, %v716_v28  ;;  %v521_v33 = vadd.f32 %v1500_v6, %v1477_v42  ;;  %v520_v38 = vadd.f32 %v1502_v7, %v1470_v34 }
 0x102   :  { %1241 = vmatprep.subr.bf16.mxu1 %v1240_v39  ;;  %v793_v29 = vstv %s1617_s4 }
 0x103   :  { %v1193_v46 = vpop.f32.mrb[20].mxu0 }
 0x104   :  { %1243 = vmatpush3.bf16.msra.mxu1 %v1498_v3  ;;  %v663_v59 = vadd.f32 %v1193_v46, %v1475_v41  ;;  %v699_v48 = vadd.f32 %v1193_v46, %v1505_v8  ;;  %v723_v49 = vadd.f32 %v1193_v46, %v1517_v12  ;;  %v735_v36 = vadd.f32 %v1193_v46, %v519_v27  ;;  %v607_v1 = vpop.f32.mrb[21].mxu0 }
 0x105   :  { %1245 = vmatprep.subr.bf16.mxu1 %v1244_v25  ;;  %v662_v30 = vadd.f32 %v607_v1, %v1480_v44  ;;  %v698_v2 = vadd.f32 %v607_v1, %v1508_v9  ;;  %v722_v42 = vadd.f32 %v607_v1, %v1520_v13  ;;  %v734_v6 = vadd.f32 %v607_v1, %v518_v32 }
 0x106   :  { %v667_v34 = vmax.f32 %v663_v59, 0.0  ;;  %v703_v7 = vmax.f32 %v699_v48, 0.0  ;;  %v727_v51 = vmax.f32 %v723_v49, 0.0  ;;  %v739_v3 = vmax.f32 %v735_v36, 0.0 }
 0x107   :  { %v666_v52 = vmax.f32 %v662_v30, 0.0  ;;  %v1196_v41 = vpop.f32.mrb[22].mxu0  ;;  %v702_v54 = vmax.f32 %v698_v2, 0.0  ;;  %v726_v8 = vmax.f32 %v722_v42, 0.0  ;;  %v738_v55 = vmax.f32 %v734_v6, 0.0 }
 0x108   :  { %1247 = vmatpush3.bf16.msra.mxu1 %v1538_v47  ;;  %v665_v12 = vadd.f32 %v1196_v41, %v1485_v50  ;;  %v701_v44 = vadd.f32 %v1196_v41, %v1511_v10  ;;  %v725_v9 = vadd.f32 %v1196_v41, %v1523_v15  ;;  %v737_v57 = vadd.f32 %v1196_v41, %v521_v33  ;;  %v617_v13 = vpop.f32.mrb[23].mxu0 }
 0x109   :  { %1249 = vmatprep.subr.bf16.mxu1 %v1248_v43  ;;  %v664_v58 = vadd.f32 %v617_v13, %v1488_v53  ;;  %v700_v60 = vadd.f32 %v617_v13, %v1514_v11  ;;  %v724_v61 = vadd.f32 %v617_v13, %v1526_v16  ;;  %v736_v62 = vadd.f32 %v617_v13, %v520_v38 }
 0x10a   :  { %v669_v63 = vmax.f32 %v665_v12, 0.0  ;;  %v1252_v0 = vpack.c.bf16 %v703_v7, %v702_v54  ;;  %v1268_v4 = vpack.c.bf16 %v727_v51, %v726_v8  ;;  %v705_v47 = vmax.f32 %v701_v44, 0.0 }
 0x10b   :  { %v668_v5 = vmax.f32 %v664_v58, 0.0  ;;  %v704_v50 = vmax.f32 %v700_v60, 0.0  ;;  %v728_v14 = vmax.f32 %v724_v61, 0.0  ;;  %v729_v10 = vmax.f32 %v725_v9, 0.0 }
 0x10c   :  { %1251 = vmatpush3.bf16.msra.mxu1 %v1250_v35  ;;  %1269 = vmatprep.subr.bf16.mxu0 %v1268_v4  ;;  %v1276_v15 = vpack.c.bf16 %v739_v3, %v738_v55  ;;  %v1262_v17 = vpack.c.bf16 %v667_v34, %v666_v52  ;;  %v740_v18 = vmax.f32 %v736_v62, 0.0  ;;  %v741_v19 = vmax.f32 %v737_v57, 0.0 }
 0x10d   :  { %1253 = vmatprep.subr.bf16.mxu1 %v1252_v0  ;;  %1271 = vmatpush3.bf16.msra.mxu0 %v1268_v4  ;;  %v1256_v53 = vpack.c.bf16 %v705_v47, %v704_v50  ;;  %v1272_v11 = vpack.c.bf16 %v729_v10, %v728_v14  ;;  %v1266_v16 = vpack.c.bf16 %v669_v63, %v668_v5 }
 0x10e   :  { %v1280_v20 = vpack.c.bf16 %v741_v19, %v740_v18 }
 0x10f   :  { %1273 = vmatprep.subr.bf16.mxu0 %v1272_v11 }
 0x110   :  { %1255 = vmatpush3.bf16.msra.mxu1 %v1543_v56  ;;  %v746_v56 = vld [vmem:[%s1616_s3] sm:$0xff]  ;;  %s1290_s3 = scalar_lea.vmem %s959_s23, 256 }
 0x111   :  { %1257 = vmatprep.subr.bf16.mxu1 %v1256_v53  ;;  %1275 = vmatpush3.bf16.msra.mxu0 %v1272_v11  ;;  %p1291_p0 = scmp.ne.s32.totalorder %s959_s23, %s1290_s3  ;;  %p1296_p2 = scmp.lt.s32.totalorder %s1290_s3, %s1290_s3 }
 0x112   :  { %1277 = vmatprep.subr.bf16.mxu0 %v1276_v15 }
 0x113   :  { %p1297_p3 = por %p1296_p2, %p1295_p1 }
 0x114   :  { %1259 = vmatpush3.bf16.msra.mxu1 %v1554_v37 }
 0x115   :  { %1261 = vmatprep.subr.bf16.mxu1 %v1552_v31  ;;  %1279 = vmatpush3.bf16.msra.mxu0 %v1276_v15  ;;  %p1298_p4 = pnand %p1297_p3, %p1291_p0 }
 0x116   :  { %1281 = vmatprep.subr.bf16.mxu0 %v1280_v20 }
 0x118   :  { %1263 = vmatpush3.bf16.msra.mxu1 %v1262_v17 }
 0x119   :  { %1265 = vmatprep.subr.bf16.mxu1 %v1557_v45  ;;  %1283 = vmatpush3.bf16.msra.mxu0 %v1280_v20 }
 0x11c   :  { %1267 = vmatpush3.bf16.msra.mxu1 %v1266_v16  ;;  %1214 = vmatmul.mubr.msk.f32.vlgmr.msra.gmra.mrb[24].mxu0 %vm794_vm1, %v751_v21 }
 0x11f   :  { %866 = vmatmul.mubr.f32.vlgmr.msra.gmra.mrb[16].mxu1 %v746_v56 }
 0x120   :  { %870 = vmatprep.mubr.f32.mxu1 %v750_v22 }
 0x123   :  { %871 = vmatmul.mubr.f32.gmra.mrb[18].mxu1 %v749_v23 }
 0x1ef   :  { %v1215_v24 = vpop.f32.mrb[24].mxu0 }
 0x1f0   :  { %v942_v25 = vpop.f32.mrb[25].mxu0 }
 0x1f2   :  { %v1101_v26 = vpop.f32.mrb[16].mxu1 }
 0x1f3   :  { %v1102_v28 = vpop.f32.mrb[17].mxu1 }
 0x1f4   :  { %v1103_v31 = vadd.f32 %v1102_v28, %v1101_v26 }
 0x1f6   :  { %v1104_v35 = vpop.f32.mrb[18].mxu1  ;;  %v868_v37 = vadd.f32 %v1103_v31, %v793_v29 }
 0x1f7   :  { %v1105_v39 = vpop.f32.mrb[19].mxu1 }
 0x1f8   :  { %v1106_v40 = vadd.f32 %v1105_v39, %v1104_v35  ;;  %v943_v43 = vadd.f32 %v942_v25, %v868_v37 }
 0x1fa   :  { %v873_v45 = vadd.f32 %v1106_v40, %v793_v29  ;;  %951 = vst [vmem:[#allocation4] sm:$0xff] %v943_v43 }
 0x1fc   :  { %v948_v27 = vadd.f32 %v1215_v24, %v873_v45 }
 0x1fe   :  { %952 = vst [vmem:[#allocation4 + $0x8] sm:$0x3] %v948_v27 }
 0x1ff   :  { %1301 = shalt.err (!%p1298_p4)
}
 0x200   :  { %s1302_s25 = scalar_lea.hbm %s1618_s5, 256 }
 0x201   :  { %p1303_p5 = scmp.ne.s32.totalorder %s1618_s5, %s1302_s25  ;;  %p1306_p6 = scmp.lt.u32.totalorder %s1302_s25, %s1618_s5 }
 0x203   :  { %p1308_p7 = pnand %p1306_p6, %p1303_p5 }
 0x205   :  { %1311 = shalt.err (!%p1308_p7)
}
 0x206   :  { %s1316_s30 = smov 128   ;;  %s1317_s6 = smov 8  }
 0x207   :  { %964 = dma.vmem_to_hbm [thread:$0]  %s959_s23, 256, %s1618_s5, [#allocation5], %s1316_s30, %s1316_s30, %s1317_s6  }
 0x208   :  { %1312 = dma.done.wait [#allocation5], 256  }
 0x209   :  { %1313 = vsyncadd [#allocation5], 4294967040 }
 0x20a   :  { %968 = vsyncpa [#allocation5], 1 }

</bundles_post_ra>
